<compile_context>
chip_gen: v7x
topology: tpu7x:2x2x1
jax: 0.10.0
libtpu: 0.0.40
codegen_flags: <defaults>
</compile_context>

<pallas_src>
import functools
import math

import jax
import jax.numpy as jnp
import numpy as np
from jax import lax
from jax.experimental import pallas as pl
from jax.experimental.pallas import tpu as pltpu


_MXU_MAX_N = 2048          # one-hot/MXU path only for feature tables this small


def _round_up(x, m):
    return -(-x // m) * m


def _vmem_capacity_bytes():
    """Physical VMEM per TensorCore, with a conservative fallback (v7x size)."""
    try:
        info = pltpu.get_tpu_info()
        cap = int(getattr(info, "vmem_capacity_bytes", 0) or 0)
        if cap > 0:
            return cap
    except Exception:
        pass
    return 64 * 1024 * 1024


# --------------------------------------------------------------------------- #
# Kernels
# --------------------------------------------------------------------------- #


def _ft_onehot_kernel(idx0_ref, val0_ref, idx1_ref, val1_ref, w_ref, b_ref,
                      out0_ref, out1_ref):
    # Small-table path.
    #   idx*/val* : (TB, K) int32 / float32 in VMEM (pre-masked in the wrapper)
    #   w_ref     : (N_pad, O_pad) float32, VMEM resident
    #   b_ref     : (8, O_pad) float32, VMEM resident (row 0 used)
    #   out*      : (TB, O_pad) float32
    tb, k_max = idx0_ref.shape
    n_pad = w_ref.shape[0]
    col = lax.broadcasted_iota(jnp.int32, (tb, n_pad), 1)

    def scaled_onehot(idx_ref, val_ref):
        oh = jnp.zeros((tb, n_pad), jnp.float32)
        for k in range(k_max):                       # static unroll; K is small
            idx_k = idx_ref[:, k:k + 1]              # (TB, 1) int32
            val_k = val_ref[:, k:k + 1]              # (TB, 1) f32 (0 when dead)
            oh = oh + jnp.where(col == idx_k, val_k, 0.0)
        return oh

    w = w_ref[...]
    bias = b_ref[0:1, :]
    oh0 = scaled_onehot(idx0_ref, val0_ref)
    oh1 = scaled_onehot(idx1_ref, val1_ref)
    out0_ref[...] = bias + jnp.dot(oh0, w, preferred_element_type=jnp.float32)
    out1_ref[...] = bias + jnp.dot(oh1, w, preferred_element_type=jnp.float32)


def _ft_gather_kernel(idx0_ref, idx1_ref, val0_ref, val1_ref, w_ref, b_ref,
                      out0_ref, out1_ref, stage0_ref, stage1_ref):
    # Large-table path.
    #   idx*_ref : (K, TB) int32 in SMEM (transposed -> tiny SMEM padding)
    #   val*_ref : (TB, K) float32 in VMEM (pre-masked)
    #   w_ref    : (N, TO) float32 in VMEM (resident across the batch sweep)
    #   b_ref    : (8, TO) float32 in VMEM (resident)
    #   out*_ref : (TB, TO) float32 in VMEM (lane-dense)
    #   stage*   : (8, TO) float32 VMEM scratch (sublane-packed gather slabs)
    k_max, tb = idx0_ref.shape
    bias8 = b_ref[...]                                   # (8, TO), hoisted

    def group_body(g, carry):
        r0 = pl.multiple_of(g * 8, 8)
        v0 = val0_ref[pl.ds(r0, 8), :]                   # (8, K)
        v1 = val1_ref[pl.ds(r0, 8), :]                   # (8, K)
        acc0 = bias8
        acc1 = bias8
        # NOTE: w_ref[pl.ds(idx, 1), :] is a dynamic-sublane slice load; rows are
        # packed one-per-sublane into the (8, TO) staging slab so the FMA,
        # accumulator chain and the (8, TO) output store below are full-sublane
        # (unmasked).  Sets 0/1 are interleaved to give two independent chains.
        for k in range(k_max):                           # static unroll; K small
            for rr in range(8):
                stage0_ref[pl.ds(rr, 1), :] = w_ref[pl.ds(idx0_ref[k, r0 + rr], 1), :]
            for rr in range(8):
                stage1_ref[pl.ds(rr, 1), :] = w_ref[pl.ds(idx1_ref[k, r0 + rr], 1), :]
            acc0 = acc0 + stage0_ref[...] * v0[:, k:k + 1]
            acc1 = acc1 + stage1_ref[...] * v1[:, k:k + 1]
        out0_ref[pl.ds(r0, 8), :] = acc0
        out1_ref[pl.ds(r0, 8), :] = acc1
        return carry

    lax.fori_loop(0, tb // 8, group_body, 0)


# --------------------------------------------------------------------------- #
# Wrapper
# --------------------------------------------------------------------------- #


def _premask(idx, val, num_inputs):
    """Fold break-on-first -1 into pre-clamped indices / pre-zeroed values."""
    idx = idx.astype(jnp.int32)
    val = val.astype(jnp.float32)
    alive = jnp.cumprod((idx != -1).astype(jnp.int32), axis=1)
    safe = jnp.clip(jnp.where(alive == 1, idx, 0), 0, num_inputs - 1)
    return safe, val * alive.astype(jnp.float32)


def _choose_o_tile(o128, fits):
    """Largest multiple-of-128 divisor of o128 whose working set fits the budget."""
    if fits(o128):
        return o128
    q = o128 // 128
    for d in range(q - 1, 0, -1):
        if q % d == 0 and fits(d * 128):
            return d * 128
    return 128


@functools.partial(jax.jit, static_argnames=("max_vmem_bytes",))
def double_feature_transformer_slice(feature_indices_0, feature_values_0,
                                     feature_indices_1, feature_values_1,
                                     weight, bias, *, max_vmem_bytes=None):
    B, K = feature_indices_0.shape
    N, O = weight.shape

    idx0, val0 = _premask(feature_indices_0, feature_values_0, N)
    idx1, val1 = _premask(feature_indices_1, feature_values_1, N)
    weight = weight.astype(jnp.float32)
    bias = bias.astype(jnp.float32)

    # Lane-dense outputs: pad O up to a multiple of 128 (zeros sliced off later).
    O128 = max(128, _round_up(O, 128))
    if O128 != O:
        weight = jnp.pad(weight, ((0, 0), (0, O128 - O)))
        bias = jnp.pad(bias, (0, O128 - O))
    bias8 = jnp.broadcast_to(bias[None, :], (8, O128))

    # Batch tile: large (<= 256) while keeping blocks legal
    # (TB is either the full padded batch or a multiple of 128).
    B8 = _round_up(B, 8)
    TB = 256 if B8 > 256 else B8

    cap = _vmem_capacity_bytes()
    budget = (cap * 3) // 4
    if max_vmem_bytes is not None:
        budget = min(budget, int(max_vmem_bytes))
    vmem_hi = (cap * 9) // 10

    def pad_batch(x, b_target):
        pad = b_target - x.shape[0]
        if pad == 0:
            return x
        widths = [(0, pad)] + [(0, 0)] * (x.ndim - 1)
        return jnp.pad(x, widths)

    # ---------------- Small-table path: one-hot + MXU matmul ---------------- #
    N128 = max(128, _round_up(N, 128))
    mxu_need = 4 * (2 * N128 * O128          # resident weight, double-buffered
                    + 4 * TB * O128          # two outputs, double-buffered
                    + 8 * TB * K             # idx/val blocks, double-buffered
                    + 2 * TB * N128          # two scaled one-hot temporaries
                    + 2 * 8 * O128) + (2 << 20)
    if N128 <= _MXU_MAX_N and mxu_need <= budget:
        if N128 != N:
            weight = jnp.pad(weight, ((0, N128 - N), (0, 0)))
        B_pad = _round_up(B8, TB)
        n_b = B_pad // TB
        idx0, val0 = pad_batch(idx0, B_pad), pad_batch(val0, B_pad)
        idx1, val1 = pad_batch(idx1, B_pad), pad_batch(val1, B_pad)

        feat_spec = pl.BlockSpec((TB, K), lambda i: (i, 0))
        out_spec = pl.BlockSpec((TB, O128), lambda i: (i, 0))
        out0, out1 = pl.pallas_call(
            _ft_onehot_kernel,
            out_shape=(jax.ShapeDtypeStruct((B_pad, O128), jnp.float32),
                       jax.ShapeDtypeStruct((B_pad, O128), jnp.float32)),
            grid=(n_b,),
            in_specs=[feat_spec, feat_spec, feat_spec, feat_spec,
                      pl.BlockSpec((N128, O128), lambda i: (0, 0)),
                      pl.BlockSpec((8, O128), lambda i: (0, 0))],
            out_specs=(out_spec, out_spec),
            compiler_params=pltpu.CompilerParams(
                dimension_semantics=("parallel",),
                vmem_limit_bytes=int(min(max(mxu_need, 8 << 20), vmem_hi))),
        )(idx0, val0, idx1, val1, weight, bias8)
        return out0[:B, :O], out1[:B, :O]

    # --------------- Large-table path: resident slab + gathers -------------- #
    def gather_need(to):
        return 4 * (2 * N * to               # weight slab, double-buffered
                    + 4 * TB * to            # two outputs, double-buffered
                    + 8 * TB * K             # two value blocks, double-buffered
                    + 4 * 8 * to             # staging slabs + bias
                    ) + (2 << 20)

    TO = _choose_o_tile(O128, lambda to: gather_need(to) <= budget)
    n_o = O128 // TO
    vmem_limit = int(min(max(gather_need(TO), 8 << 20), vmem_hi))

    split_cores = (n_o > 1) and (B8 > 256)           # TB == 256 in this case
    if split_cores:
        # Leading size-2 "parallel" axis: each TensorCore sweeps half the batch
        # with its own resident O-slab (no-op on single-TC chips).
        B_pad = _round_up(B8, 2 * TB)
        n_half = B_pad // (2 * TB)
        grid = (2, n_o, n_half)
        dims = ("parallel", "arbitrary", "arbitrary")
        idx_map = lambda c, o, i: (0, c * n_half + i)
        val_map = lambda c, o, i: (c * n_half + i, 0)
        w_map = lambda c, o, i: (0, o)
        b_map = lambda c, o, i: (0, o)
        out_map = lambda c, o, i: (c * n_half + i, o)
    elif n_o > 1:
        B_pad = _round_up(B8, TB)
        grid = (n_o, B_pad // TB)                    # O-slab outer, batch inner
        dims = ("arbitrary", "arbitrary")
        idx_map = lambda o, i: (0, i)
        val_map = lambda o, i: (i, 0)
        w_map = lambda o, i: (0, o)
        b_map = lambda o, i: (0, o)
        out_map = lambda o, i: (i, o)
    else:
        B_pad = _round_up(B8, TB)
        grid = (B_pad // TB,)
        dims = ("parallel",)
        idx_map = lambda i: (0, i)
        val_map = lambda i: (i, 0)
        w_map = lambda i: (0, 0)
        b_map = lambda i: (0, 0)
        out_map = lambda i: (i, 0)

    idx0, val0 = pad_batch(idx0, B_pad), pad_batch(val0, B_pad)
    idx1, val1 = pad_batch(idx1, B_pad), pad_batch(val1, B_pad)
    idx0_t = idx0.T                                  # (K, B_pad): long axis last
    idx1_t = idx1.T

    idx_spec = pl.BlockSpec((K, TB), idx_map, memory_space=pltpu.MemorySpace.SMEM)
    val_spec = pl.BlockSpec((TB, K), val_map)
    out_spec = pl.BlockSpec((TB, TO), out_map)

    out0, out1 = pl.pallas_call(
        _ft_gather_kernel,
        out_shape=(jax.ShapeDtypeStruct((B_pad, O128), jnp.float32),
                   jax.ShapeDtypeStruct((B_pad, O128), jnp.float32)),
        grid=grid,
        in_specs=[idx_spec, idx_spec, val_spec, val_spec,
                  pl.BlockSpec((N, TO), w_map),
                  pl.BlockSpec((8, TO), b_map)],
        out_specs=(out_spec, out_spec),
        scratch_shapes=[pltpu.VMEM((8, TO), jnp.float32),
                        pltpu.VMEM((8, TO), jnp.float32)],
        compiler_params=pltpu.CompilerParams(
            dimension_semantics=dims,
            vmem_limit_bytes=vmem_limit),
    )(idx0_t, idx1_t, val0, val1, weight, bias8)
    return out0[:B, :O], out1[:B, :O]


# --------------------------------------------------------------------------- #
# Reference + test
# --------------------------------------------------------------------------- #


def _reference_forward(idx, val, weight, bias):
    valid = idx != -1
    keep = jnp.cumprod(valid.astype(jnp.int32), axis=1).astype(jnp.float32)
    safe = jnp.where(valid, idx, 0)
    gathered = weight[safe]                               # (B, K, O)
    contrib = (val * keep)[:, :, None] * gathered
    return bias[None, :] + jnp.sum(contrib, axis=1)


if __name__ == "__main__":
    def as_bf16_grid(x):
        # Round test data onto the bf16 grid so the comparison is insensitive to
        # how the MXU decomposes f32 matmuls; the kernel itself runs in f32.
        return x.astype(jnp.bfloat16).astype(jnp.float32)

    def run_case(key, batch, max_active, num_inputs, num_outputs,
                 max_vmem_bytes=None):
        k_w, k_b, k_i0, k_v0, k_n0, k_i1, k_v1, k_n1 = jax.random.split(key, 8)
        sigma = math.sqrt(1.0 / num_inputs)
        weight = as_bf16_grid(jax.random.uniform(
            k_w, (num_inputs, num_outputs), jnp.float32, -sigma, sigma))
        bias = as_bf16_grid(jax.random.uniform(
            k_b, (num_outputs,), jnp.float32, -sigma, sigma))

        def make_features(k_idx, k_val, k_num):
            idx = jax.random.randint(k_idx, (batch, max_active), 0, num_inputs,
                                     jnp.int32)
            vals = as_bf16_grid(jax.random.uniform(
                k_val, (batch, max_active), jnp.float32, 0.5, 1.5))
            num_active = jax.random.randint(k_num, (batch, 1), 1, max_active + 1,
                                            jnp.int32)
            pos = jnp.arange(max_active, dtype=jnp.int32)[None, :]
            # Slots at/after num_active are -1; their values stay random to
            # exercise the break-on-first--1 masking.
            idx = jnp.where(pos < num_active, idx, -1).astype(jnp.int32)
            return idx, vals

        fi0, fv0 = make_features(k_i0, k_v0, k_n0)
        fi1, fv1 = make_features(k_i1, k_v1, k_n1)

        out0, out1 = double_feature_transformer_slice(
            fi0, fv0, fi1, fv1, weight, bias, max_vmem_bytes=max_vmem_bytes)
        out0 = jax.block_until_ready(out0)
        out1 = jax.block_until_ready(out1)

        ref0 = _reference_forward(fi0, fv0, weight, bias)
        ref1 = _reference_forward(fi1, fv1, weight, bias)
        assert out0.shape == (batch, num_outputs) and out0.dtype == jnp.float32
        assert out1.shape == (batch, num_outputs) and out1.dtype == jnp.float32
        np.testing.assert_allclose(np.asarray(out0), np.asarray(ref0),
                                   rtol=1e-5, atol=1e-5)
        np.testing.assert_allclose(np.asarray(out1), np.asarray(ref1),
                                   rtol=1e-5, atol=1e-5)

    root = jax.random.PRNGKey(0)
    k1, k2, k3 = jax.random.split(root, 3)

    # 1) Small feature table -> scaled one-hot / MXU path.
    run_case(k1, batch=16, max_active=8, num_inputs=64, num_outputs=256)
    # 2) Larger table -> VMEM-resident-slab gather path (single O slab).
    run_case(k2, batch=16, max_active=8, num_inputs=4096, num_outputs=256)
    # 3) Big table under a tight VMEM budget -> O-slabbed gather path with the
    #    leading core-parallel grid axis.
    run_case(k3, batch=600, max_active=8, num_inputs=8192, num_outputs=512,
             max_vmem_bytes=24 * 1024 * 1024)

    print("KERNEL_OK")
</pallas_src>

<mosaic_0001>
module attributes {stable_mosaic.version = 11 : i64} {
  func.func @_ft_onehot_kernel(%arg0: i32, %arg1: memref<16x8xi32, #tpu.memory_space<vmem>>, %arg2: memref<16x8xf32, #tpu.memory_space<vmem>>, %arg3: memref<16x8xi32, #tpu.memory_space<vmem>>, %arg4: memref<16x8xf32, #tpu.memory_space<vmem>>, %arg5: memref<128x256xf32, #tpu.memory_space<vmem>>, %arg6: memref<8x256xf32, #tpu.memory_space<vmem>>, %arg7: memref<16x256xf32, #tpu.memory_space<vmem>>, %arg8: memref<16x256xf32, #tpu.memory_space<vmem>>) attributes {dimension_semantics = [#tpu.dimension_semantics<parallel>], iteration_bounds = array<i64: 1>, scalar_prefetch = 0 : i64, scratch_operands = 0 : i64, tpu.core_type = #tpu.core_type<tc>, window_params = [{transform_indices = @transform_0, window_bounds = array<i64: 16, 8>}, {transform_indices = @transform_1, window_bounds = array<i64: 16, 8>}, {transform_indices = @transform_2, window_bounds = array<i64: 16, 8>}, {transform_indices = @transform_3, window_bounds = array<i64: 16, 8>}, {pipeline_mode = #tpu.pipeline_mode<synchronous>, transform_indices = @transform_4, window_bounds = array<i64: 128, 256>}, {pipeline_mode = #tpu.pipeline_mode<synchronous>, transform_indices = @transform_5, window_bounds = array<i64: 8, 256>}, {transform_indices = @transform_6, window_bounds = array<i64: 16, 256>}, {transform_indices = @transform_7, window_bounds = array<i64: 16, 256>}]} {
    %0 = tpu.iota {dimensions = array<i32: 1>} : vector<16x128xi32>
    %c0 = arith.constant 0 : index
    %c0_0 = arith.constant 0 : index
    %1 = vector.load %arg5[%c0, %c0_0] : memref<128x256xf32, #tpu.memory_space<vmem>>, vector<128x256xf32>
    %c0_1 = arith.constant 0 : index
    %c0_2 = arith.constant 0 : index
    %2 = vector.load %arg6[%c0_1, %c0_2] : memref<8x256xf32, #tpu.memory_space<vmem>>, vector<1x256xf32>
    %cst = arith.constant 0.000000e+00 : f32
    %3 = vector.broadcast %cst : f32 to vector<16x128xf32>
    %c0_3 = arith.constant 0 : index
    %c0_4 = arith.constant 0 : index
    %4 = vector.load %arg1[%c0_3, %c0_4] : memref<16x8xi32, #tpu.memory_space<vmem>>, vector<16x1xi32>
    %c0_5 = arith.constant 0 : index
    %c0_6 = arith.constant 0 : index
    %5 = vector.load %arg2[%c0_5, %c0_6] : memref<16x8xf32, #tpu.memory_space<vmem>>, vector<16x1xf32>
    %6 = vector.broadcast %4 : vector<16x1xi32> to vector<16x128xi32>
    %7 = arith.cmpi eq, %0, %6 : vector<16x128xi32>
    %cst_7 = arith.constant 0.000000e+00 : f32
    %8 = vector.shape_cast %5 : vector<16x1xf32> to vector<16x1xf32>
    %9 = vector.broadcast %8 : vector<16x1xf32> to vector<16x128xf32>
    %10 = vector.broadcast %cst_7 : f32 to vector<16x128xf32>
    %11 = arith.select %7, %9, %10 : vector<16x128xi1>, vector<16x128xf32>
    %12 = arith.addf %3, %11 : vector<16x128xf32>
    %c0_8 = arith.constant 0 : index
    %c1 = arith.constant 1 : index
    %13 = vector.load %arg1[%c0_8, %c1] : memref<16x8xi32, #tpu.memory_space<vmem>>, vector<16x1xi32>
    %c0_9 = arith.constant 0 : index
    %c1_10 = arith.constant 1 : index
    %14 = vector.load %arg2[%c0_9, %c1_10] : memref<16x8xf32, #tpu.memory_space<vmem>>, vector<16x1xf32>
    %15 = vector.broadcast %13 : vector<16x1xi32> to vector<16x128xi32>
    %16 = arith.cmpi eq, %0, %15 : vector<16x128xi32>
    %cst_11 = arith.constant 0.000000e+00 : f32
    %17 = vector.shape_cast %14 : vector<16x1xf32> to vector<16x1xf32>
    %18 = vector.broadcast %17 : vector<16x1xf32> to vector<16x128xf32>
    %19 = vector.broadcast %cst_11 : f32 to vector<16x128xf32>
    %20 = arith.select %16, %18, %19 : vector<16x128xi1>, vector<16x128xf32>
    %21 = arith.addf %12, %20 : vector<16x128xf32>
    %c0_12 = arith.constant 0 : index
    %c2 = arith.constant 2 : index
    %22 = vector.load %arg1[%c0_12, %c2] : memref<16x8xi32, #tpu.memory_space<vmem>>, vector<16x1xi32>
    %c0_13 = arith.constant 0 : index
    %c2_14 = arith.constant 2 : index
    %23 = vector.load %arg2[%c0_13, %c2_14] : memref<16x8xf32, #tpu.memory_space<vmem>>, vector<16x1xf32>
    %24 = vector.broadcast %22 : vector<16x1xi32> to vector<16x128xi32>
    %25 = arith.cmpi eq, %0, %24 : vector<16x128xi32>
    %cst_15 = arith.constant 0.000000e+00 : f32
    %26 = vector.shape_cast %23 : vector<16x1xf32> to vector<16x1xf32>
    %27 = vector.broadcast %26 : vector<16x1xf32> to vector<16x128xf32>
    %28 = vector.broadcast %cst_15 : f32 to vector<16x128xf32>
    %29 = arith.select %25, %27, %28 : vector<16x128xi1>, vector<16x128xf32>
    %30 = arith.addf %21, %29 : vector<16x128xf32>
    %c0_16 = arith.constant 0 : index
    %c3 = arith.constant 3 : index
    %31 = vector.load %arg1[%c0_16, %c3] : memref<16x8xi32, #tpu.memory_space<vmem>>, vector<16x1xi32>
    %c0_17 = arith.constant 0 : index
    %c3_18 = arith.constant 3 : index
    %32 = vector.load %arg2[%c0_17, %c3_18] : memref<16x8xf32, #tpu.memory_space<vmem>>, vector<16x1xf32>
    %33 = vector.broadcast %31 : vector<16x1xi32> to vector<16x128xi32>
    %34 = arith.cmpi eq, %0, %33 : vector<16x128xi32>
    %cst_19 = arith.constant 0.000000e+00 : f32
    %35 = vector.shape_cast %32 : vector<16x1xf32> to vector<16x1xf32>
    %36 = vector.broadcast %35 : vector<16x1xf32> to vector<16x128xf32>
    %37 = vector.broadcast %cst_19 : f32 to vector<16x128xf32>
    %38 = arith.select %34, %36, %37 : vector<16x128xi1>, vector<16x128xf32>
    %39 = arith.addf %30, %38 : vector<16x128xf32>
    %c0_20 = arith.constant 0 : index
    %c4 = arith.constant 4 : index
    %40 = vector.load %arg1[%c0_20, %c4] : memref<16x8xi32, #tpu.memory_space<vmem>>, vector<16x1xi32>
    %c0_21 = arith.constant 0 : index
    %c4_22 = arith.constant 4 : index
    %41 = vector.load %arg2[%c0_21, %c4_22] : memref<16x8xf32, #tpu.memory_space<vmem>>, vector<16x1xf32>
    %42 = vector.broadcast %40 : vector<16x1xi32> to vector<16x128xi32>
    %43 = arith.cmpi eq, %0, %42 : vector<16x128xi32>
    %cst_23 = arith.constant 0.000000e+00 : f32
    %44 = vector.shape_cast %41 : vector<16x1xf32> to vector<16x1xf32>
    %45 = vector.broadcast %44 : vector<16x1xf32> to vector<16x128xf32>
    %46 = vector.broadcast %cst_23 : f32 to vector<16x128xf32>
    %47 = arith.select %43, %45, %46 : vector<16x128xi1>, vector<16x128xf32>
    %48 = arith.addf %39, %47 : vector<16x128xf32>
    %c0_24 = arith.constant 0 : index
    %c5 = arith.constant 5 : index
    %49 = vector.load %arg1[%c0_24, %c5] : memref<16x8xi32, #tpu.memory_space<vmem>>, vector<16x1xi32>
    %c0_25 = arith.constant 0 : index
    %c5_26 = arith.constant 5 : index
    %50 = vector.load %arg2[%c0_25, %c5_26] : memref<16x8xf32, #tpu.memory_space<vmem>>, vector<16x1xf32>
    %51 = vector.broadcast %49 : vector<16x1xi32> to vector<16x128xi32>
    %52 = arith.cmpi eq, %0, %51 : vector<16x128xi32>
    %cst_27 = arith.constant 0.000000e+00 : f32
    %53 = vector.shape_cast %50 : vector<16x1xf32> to vector<16x1xf32>
    %54 = vector.broadcast %53 : vector<16x1xf32> to vector<16x128xf32>
    %55 = vector.broadcast %cst_27 : f32 to vector<16x128xf32>
    %56 = arith.select %52, %54, %55 : vector<16x128xi1>, vector<16x128xf32>
    %57 = arith.addf %48, %56 : vector<16x128xf32>
    %c0_28 = arith.constant 0 : index
    %c6 = arith.constant 6 : index
    %58 = vector.load %arg1[%c0_28, %c6] : memref<16x8xi32, #tpu.memory_space<vmem>>, vector<16x1xi32>
    %c0_29 = arith.constant 0 : index
    %c6_30 = arith.constant 6 : index
    %59 = vector.load %arg2[%c0_29, %c6_30] : memref<16x8xf32, #tpu.memory_space<vmem>>, vector<16x1xf32>
    %60 = vector.broadcast %58 : vector<16x1xi32> to vector<16x128xi32>
    %61 = arith.cmpi eq, %0, %60 : vector<16x128xi32>
    %cst_31 = arith.constant 0.000000e+00 : f32
    %62 = vector.shape_cast %59 : vector<16x1xf32> to vector<16x1xf32>
    %63 = vector.broadcast %62 : vector<16x1xf32> to vector<16x128xf32>
    %64 = vector.broadcast %cst_31 : f32 to vector<16x128xf32>
    %65 = arith.select %61, %63, %64 : vector<16x128xi1>, vector<16x128xf32>
    %66 = arith.addf %57, %65 : vector<16x128xf32>
    %c0_32 = arith.constant 0 : index
    %c7 = arith.constant 7 : index
    %67 = vector.load %arg1[%c0_32, %c7] : memref<16x8xi32, #tpu.memory_space<vmem>>, vector<16x1xi32>
    %c0_33 = arith.constant 0 : index
    %c7_34 = arith.constant 7 : index
    %68 = vector.load %arg2[%c0_33, %c7_34] : memref<16x8xf32, #tpu.memory_space<vmem>>, vector<16x1xf32>
    %69 = vector.broadcast %67 : vector<16x1xi32> to vector<16x128xi32>
    %70 = arith.cmpi eq, %0, %69 : vector<16x128xi32>
    %cst_35 = arith.constant 0.000000e+00 : f32
    %71 = vector.shape_cast %68 : vector<16x1xf32> to vector<16x1xf32>
    %72 = vector.broadcast %71 : vector<16x1xf32> to vector<16x128xf32>
    %73 = vector.broadcast %cst_35 : f32 to vector<16x128xf32>
    %74 = arith.select %70, %72, %73 : vector<16x128xi1>, vector<16x128xf32>
    %75 = arith.addf %66, %74 : vector<16x128xf32>
    %cst_36 = arith.constant 0.000000e+00 : f32
    %76 = vector.broadcast %cst_36 : f32 to vector<16x128xf32>
    %c0_37 = arith.constant 0 : index
    %c0_38 = arith.constant 0 : index
    %77 = vector.load %arg3[%c0_37, %c0_38] : memref<16x8xi32, #tpu.memory_space<vmem>>, vector<16x1xi32>
    %c0_39 = arith.constant 0 : index
    %c0_40 = arith.constant 0 : index
    %78 = vector.load %arg4[%c0_39, %c0_40] : memref<16x8xf32, #tpu.memory_space<vmem>>, vector<16x1xf32>
    %79 = vector.broadcast %77 : vector<16x1xi32> to vector<16x128xi32>
    %80 = arith.cmpi eq, %0, %79 : vector<16x128xi32>
    %cst_41 = arith.constant 0.000000e+00 : f32
    %81 = vector.shape_cast %78 : vector<16x1xf32> to vector<16x1xf32>
    %82 = vector.broadcast %81 : vector<16x1xf32> to vector<16x128xf32>
    %83 = vector.broadcast %cst_41 : f32 to vector<16x128xf32>
    %84 = arith.select %80, %82, %83 : vector<16x128xi1>, vector<16x128xf32>
    %85 = arith.addf %76, %84 : vector<16x128xf32>
    %c0_42 = arith.constant 0 : index
    %c1_43 = arith.constant 1 : index
    %86 = vector.load %arg3[%c0_42, %c1_43] : memref<16x8xi32, #tpu.memory_space<vmem>>, vector<16x1xi32>
    %c0_44 = arith.constant 0 : index
    %c1_45 = arith.constant 1 : index
    %87 = vector.load %arg4[%c0_44, %c1_45] : memref<16x8xf32, #tpu.memory_space<vmem>>, vector<16x1xf32>
    %88 = vector.broadcast %86 : vector<16x1xi32> to vector<16x128xi32>
    %89 = arith.cmpi eq, %0, %88 : vector<16x128xi32>
    %cst_46 = arith.constant 0.000000e+00 : f32
    %90 = vector.shape_cast %87 : vector<16x1xf32> to vector<16x1xf32>
    %91 = vector.broadcast %90 : vector<16x1xf32> to vector<16x128xf32>
    %92 = vector.broadcast %cst_46 : f32 to vector<16x128xf32>
    %93 = arith.select %89, %91, %92 : vector<16x128xi1>, vector<16x128xf32>
    %94 = arith.addf %85, %93 : vector<16x128xf32>
    %c0_47 = arith.constant 0 : index
    %c2_48 = arith.constant 2 : index
    %95 = vector.load %arg3[%c0_47, %c2_48] : memref<16x8xi32, #tpu.memory_space<vmem>>, vector<16x1xi32>
    %c0_49 = arith.constant 0 : index
    %c2_50 = arith.constant 2 : index
    %96 = vector.load %arg4[%c0_49, %c2_50] : memref<16x8xf32, #tpu.memory_space<vmem>>, vector<16x1xf32>
    %97 = vector.broadcast %95 : vector<16x1xi32> to vector<16x128xi32>
    %98 = arith.cmpi eq, %0, %97 : vector<16x128xi32>
    %cst_51 = arith.constant 0.000000e+00 : f32
    %99 = vector.shape_cast %96 : vector<16x1xf32> to vector<16x1xf32>
    %100 = vector.broadcast %99 : vector<16x1xf32> to vector<16x128xf32>
    %101 = vector.broadcast %cst_51 : f32 to vector<16x128xf32>
    %102 = arith.select %98, %100, %101 : vector<16x128xi1>, vector<16x128xf32>
    %103 = arith.addf %94, %102 : vector<16x128xf32>
    %c0_52 = arith.constant 0 : index
    %c3_53 = arith.constant 3 : index
    %104 = vector.load %arg3[%c0_52, %c3_53] : memref<16x8xi32, #tpu.memory_space<vmem>>, vector<16x1xi32>
    %c0_54 = arith.constant 0 : index
    %c3_55 = arith.constant 3 : index
    %105 = vector.load %arg4[%c0_54, %c3_55] : memref<16x8xf32, #tpu.memory_space<vmem>>, vector<16x1xf32>
    %106 = vector.broadcast %104 : vector<16x1xi32> to vector<16x128xi32>
    %107 = arith.cmpi eq, %0, %106 : vector<16x128xi32>
    %cst_56 = arith.constant 0.000000e+00 : f32
    %108 = vector.shape_cast %105 : vector<16x1xf32> to vector<16x1xf32>
    %109 = vector.broadcast %108 : vector<16x1xf32> to vector<16x128xf32>
    %110 = vector.broadcast %cst_56 : f32 to vector<16x128xf32>
    %111 = arith.select %107, %109, %110 : vector<16x128xi1>, vector<16x128xf32>
    %112 = arith.addf %103, %111 : vector<16x128xf32>
    %c0_57 = arith.constant 0 : index
    %c4_58 = arith.constant 4 : index
    %113 = vector.load %arg3[%c0_57, %c4_58] : memref<16x8xi32, #tpu.memory_space<vmem>>, vector<16x1xi32>
    %c0_59 = arith.constant 0 : index
    %c4_60 = arith.constant 4 : index
    %114 = vector.load %arg4[%c0_59, %c4_60] : memref<16x8xf32, #tpu.memory_space<vmem>>, vector<16x1xf32>
    %115 = vector.broadcast %113 : vector<16x1xi32> to vector<16x128xi32>
    %116 = arith.cmpi eq, %0, %115 : vector<16x128xi32>
    %cst_61 = arith.constant 0.000000e+00 : f32
    %117 = vector.shape_cast %114 : vector<16x1xf32> to vector<16x1xf32>
    %118 = vector.broadcast %117 : vector<16x1xf32> to vector<16x128xf32>
    %119 = vector.broadcast %cst_61 : f32 to vector<16x128xf32>
    %120 = arith.select %116, %118, %119 : vector<16x128xi1>, vector<16x128xf32>
    %121 = arith.addf %112, %120 : vector<16x128xf32>
    %c0_62 = arith.constant 0 : index
    %c5_63 = arith.constant 5 : index
    %122 = vector.load %arg3[%c0_62, %c5_63] : memref<16x8xi32, #tpu.memory_space<vmem>>, vector<16x1xi32>
    %c0_64 = arith.constant 0 : index
    %c5_65 = arith.constant 5 : index
    %123 = vector.load %arg4[%c0_64, %c5_65] : memref<16x8xf32, #tpu.memory_space<vmem>>, vector<16x1xf32>
    %124 = vector.broadcast %122 : vector<16x1xi32> to vector<16x128xi32>
    %125 = arith.cmpi eq, %0, %124 : vector<16x128xi32>
    %cst_66 = arith.constant 0.000000e+00 : f32
    %126 = vector.shape_cast %123 : vector<16x1xf32> to vector<16x1xf32>
    %127 = vector.broadcast %126 : vector<16x1xf32> to vector<16x128xf32>
    %128 = vector.broadcast %cst_66 : f32 to vector<16x128xf32>
    %129 = arith.select %125, %127, %128 : vector<16x128xi1>, vector<16x128xf32>
    %130 = arith.addf %121, %129 : vector<16x128xf32>
    %c0_67 = arith.constant 0 : index
    %c6_68 = arith.constant 6 : index
    %131 = vector.load %arg3[%c0_67, %c6_68] : memref<16x8xi32, #tpu.memory_space<vmem>>, vector<16x1xi32>
    %c0_69 = arith.constant 0 : index
    %c6_70 = arith.constant 6 : index
    %132 = vector.load %arg4[%c0_69, %c6_70] : memref<16x8xf32, #tpu.memory_space<vmem>>, vector<16x1xf32>
    %133 = vector.broadcast %131 : vector<16x1xi32> to vector<16x128xi32>
    %134 = arith.cmpi eq, %0, %133 : vector<16x128xi32>
    %cst_71 = arith.constant 0.000000e+00 : f32
    %135 = vector.shape_cast %132 : vector<16x1xf32> to vector<16x1xf32>
    %136 = vector.broadcast %135 : vector<16x1xf32> to vector<16x128xf32>
    %137 = vector.broadcast %cst_71 : f32 to vector<16x128xf32>
    %138 = arith.select %134, %136, %137 : vector<16x128xi1>, vector<16x128xf32>
    %139 = arith.addf %130, %138 : vector<16x128xf32>
    %c0_72 = arith.constant 0 : index
    %c7_73 = arith.constant 7 : index
    %140 = vector.load %arg3[%c0_72, %c7_73] : memref<16x8xi32, #tpu.memory_space<vmem>>, vector<16x1xi32>
    %c0_74 = arith.constant 0 : index
    %c7_75 = arith.constant 7 : index
    %141 = vector.load %arg4[%c0_74, %c7_75] : memref<16x8xf32, #tpu.memory_space<vmem>>, vector<16x1xf32>
    %142 = vector.broadcast %140 : vector<16x1xi32> to vector<16x128xi32>
    %143 = arith.cmpi eq, %0, %142 : vector<16x128xi32>
    %cst_76 = arith.constant 0.000000e+00 : f32
    %144 = vector.shape_cast %141 : vector<16x1xf32> to vector<16x1xf32>
    %145 = vector.broadcast %144 : vector<16x1xf32> to vector<16x128xf32>
    %146 = vector.broadcast %cst_76 : f32 to vector<16x128xf32>
    %147 = arith.select %143, %145, %146 : vector<16x128xi1>, vector<16x128xf32>
    %148 = arith.addf %139, %147 : vector<16x128xf32>
    %cst_77 = arith.constant dense<0.000000e+00> : vector<16x256xf32>
    %149 = tpu.matmul %75, %1, %cst_77 {dimension_numbers = #tpu.dot_dimension_numbers<[1], [0], [0], [1], [0, 0, 1, 1], [], []>} : vector<16x128xf32>, vector<128x256xf32>, vector<16x256xf32> -> vector<16x256xf32>
    %150 = vector.broadcast %2 : vector<1x256xf32> to vector<16x256xf32>
    %151 = arith.addf %150, %149 : vector<16x256xf32>
    %c0_78 = arith.constant 0 : index
    %c0_79 = arith.constant 0 : index
    %152 = vector.load %arg7[%c0_78, %c0_79] : memref<16x256xf32, #tpu.memory_space<vmem>>, vector<16x256xf32>
    tpu.vector_store %arg7[%c0_78, %c0_79], %151 {strides = array<i32>} : memref<16x256xf32, #tpu.memory_space<vmem>>, vector<16x256xf32>,
    %cst_80 = arith.constant dense<0.000000e+00> : vector<16x256xf32>
    %153 = tpu.matmul %148, %1, %cst_80 {dimension_numbers = #tpu.dot_dimension_numbers<[1], [0], [0], [1], [0, 0, 1, 1], [], []>} : vector<16x128xf32>, vector<128x256xf32>, vector<16x256xf32> -> vector<16x256xf32>
    %154 = vector.broadcast %2 : vector<1x256xf32> to vector<16x256xf32>
    %155 = arith.addf %154, %153 : vector<16x256xf32>
    %c0_81 = arith.constant 0 : index
    %c0_82 = arith.constant 0 : index
    %156 = vector.load %arg8[%c0_81, %c0_82] : memref<16x256xf32, #tpu.memory_space<vmem>>, vector<16x256xf32>
    tpu.vector_store %arg8[%c0_81, %c0_82], %155 {strides = array<i32>} : memref<16x256xf32, #tpu.memory_space<vmem>>, vector<16x256xf32>,
    return
  }
  func.func @transform_0(%arg0: i32) -> (i32, i32) {
    %c0_i32 = arith.constant 0 : i32
    %c0_i32_0 = arith.constant 0 : i32
    return %arg0, %c0_i32 : i32, i32
  }
  func.func @transform_1(%arg0: i32) -> (i32, i32) {
    %c0_i32 = arith.constant 0 : i32
    %c0_i32_0 = arith.constant 0 : i32
    return %arg0, %c0_i32 : i32, i32
  }
  func.func @transform_2(%arg0: i32) -> (i32, i32) {
    %c0_i32 = arith.constant 0 : i32
    %c0_i32_0 = arith.constant 0 : i32
    return %arg0, %c0_i32 : i32, i32
  }
  func.func @transform_3(%arg0: i32) -> (i32, i32) {
    %c0_i32 = arith.constant 0 : i32
    %c0_i32_0 = arith.constant 0 : i32
    return %arg0, %c0_i32 : i32, i32
  }
  func.func @transform_4(%arg0: i32) -> (i32, i32) {
    %c0_i32 = arith.constant 0 : i32
    %c0_i32_0 = arith.constant 0 : i32
    %c0_i32_1 = arith.constant 0 : i32
    return %c0_i32, %c0_i32_0 : i32, i32
  }
  func.func @transform_5(%arg0: i32) -> (i32, i32) {
    %c0_i32 = arith.constant 0 : i32
    %c0_i32_0 = arith.constant 0 : i32
    %c0_i32_1 = arith.constant 0 : i32
    return %c0_i32, %c0_i32_0 : i32, i32
  }
  func.func @transform_6(%arg0: i32) -> (i32, i32) {
    %c0_i32 = arith.constant 0 : i32
    %c0_i32_0 = arith.constant 0 : i32
    return %arg0, %c0_i32 : i32, i32
  }
  func.func @transform_7(%arg0: i32) -> (i32, i32) {
    %c0_i32 = arith.constant 0 : i32
    %c0_i32_0 = arith.constant 0 : i32
    return %arg0, %c0_i32 : i32, i32
  }
}

</mosaic_0001>

<bundles_post_ra>
// kernel: double_feature_transformer_slice.1
= control target key start
LH: loop header
LB: loop body
LE: loop exit
PB: predicated region body
PF: predicated region fallthrough
CT: control target
= control target key end

     0   :  { %13 = vsyncpa [#allocation3], 0  ;;  %v766_v2 = vmov 0   ;;  %s1113_s0 = inlined_call_operand.vmem [shape: s32[16,8], index: 0, kind: input, shape index: {}]   ;;  %s1114_s1 = inlined_call_operand.vmem [shape: f32[16,8], index: 1, kind: input, shape index: {}]   ;;  %s1115_s2 = inlined_call_operand.vmem [shape: s32[16,8], index: 2, kind: input, shape index: {}]   ;;  %s1116_s3 = inlined_call_operand.vmem [shape: f32[16,8], index: 3, kind: input, shape index: {}]   ;;  %s1117_s4 = inlined_call_operand.vmem [shape: f32[128,256], index: 4, kind: input, shape index: {}]   ;;  %s1118_s5 = inlined_call_operand.vmem [shape: f32[8,256], index: 5, kind: input, shape index: {}]   ;;  %s1119_s6 = inlined_call_operand.hbm [shape: f32[16,256], index: 6, kind: output, shape index: {0}]   ;;  %s1120_s7 = inlined_call_operand.hbm [shape: f32[16,256], index: 7, kind: output, shape index: {1}]  }
   0x1   :  { %v822_v0 = vld [vmem:[%s1115_s2] sm:$0xff]  ;;  %685 = vset.pattern.permute.xlu1 %v766_v2  ;;  %684 = vset.pattern.permute.xlu0 %v766_v2 }
   0x2   :  { %v827_v1 = vld [vmem:[%s1113_s0] sm:$0xff]  ;;  %233 = vperm.xlu1 %685, %v822_v0  }
   0x3   :  { %67 = vperm.xlu0 %684, %v827_v1  }
   0x4   :  { %14 = vsyncpa [#allocation5], 0  ;;  %v834_v3 = vld [vmem:[%s1113_s0 + $0x8] sm:$0xff]  ;;  %v767_v4 = vmov 1   ;;  %v846_v6 = vld [vmem:[%s1114_s1] sm:$0xff]  ;;  %v768_v8 = vmov 2   ;;  %v27_v35 = vlaneseq }
   0x5   :  { %v841_v5 = vld [vmem:[%s1115_s2 + $0x8] sm:$0xff]  ;;  %v853_v7 = vld [vmem:[%s1116_s3] sm:$0xff]  ;;  %v769_v11 = vmov 3   ;;  %v770_v12 = vmov 4   ;;  %v771_v13 = vmov 5   ;;  %v772_v14 = vmov 6  }
   0x6   :  { %686 = vset.pattern.permute.xlu1 %v767_v4  ;;  %v863_v9 = vld [vmem:[%s1116_s3 + $0x8] sm:$0xff]  ;;  %v773_v15 = vmov 7   ;;  %v32_v17 = vld [vmem:[%s1117_s4 + $0x18] sm:$0xff]  ;;  %v29_v19 = vld [vmem:[%s1117_s4] sm:$0xff]  ;;  %v971_v44 = vand.u32 127, %v27_v35  ;;  %s775_s24 = smov [#allocation2]  }
   0x7   :  { %70 = vperm.xlu0 %684, %v834_v3   ;;  %255 = vperm.xlu1 %686, %v822_v0   ;;  %v872_v10 = vld [vmem:[%s1114_s1 + $0x8] sm:$0xff]  ;;  %v31_v20 = vld [vmem:[%s1117_s4 + $0x10] sm:$0xff]  ;;  %v36_v23 = vld [vmem:[%s1117_s4 + $0x38] sm:$0xff]  ;;  %s580_s25 = sshll.u32 %s775_s24, 4  ;;  %s581_s25 = int_to_ptr.vmem [resolvable:$true] %s580_s25 }
   0x8   :  { %v30_v16 = vld [vmem:[%s1117_s4 + $0x8] sm:$0xff]  ;;  %v609_v21 = vpack.c.bf16 %v31_v20, %v29_v19  ;;  %v33_v25 = vld [vmem:[%s1117_s4 + $0x20] sm:$0xff]  ;;  %v35_v26 = vld [vmem:[%s1117_s4 + $0x30] sm:$0xff]  ;;  %s718_s27 = scalar_lea.vmem %s581_s25, 512  ;;  %p723_p1 = scmp.lt.s32.totalorder %s581_s25, %s581_s25 }
   0x9   :  { %v607_v18 = vpack.c.bf16 %v32_v17, %v30_v16  ;;  %v34_v22 = vld [vmem:[%s1117_s4 + $0x28] sm:$0xff]  ;;  %v613_v27 = vpack.c.bf16 %v35_v26, %v33_v25  ;;  %v40_v31 = vld [vmem:[%s1117_s4 + $0x58] sm:$0xff]  ;;  %v37_v33 = vld [vmem:[%s1117_s4 + $0x40] sm:$0xff]  ;;  %p719_p0 = scmp.ne.s32.totalorder %s581_s25, %s718_s27  ;;  %p724_p2 = scmp.lt.s32.totalorder %s718_s27, %s718_s27 }
   0xa   :  { %v611_v24 = vpack.c.bf16 %v36_v23, %v34_v22  ;;  %v38_v30 = vld [vmem:[%s1117_s4 + $0x48] sm:$0xff]  ;;  %v39_v34 = vld [vmem:[%s1117_s4 + $0x50] sm:$0xff]  ;;  %v44_v39 = vld [vmem:[%s1117_s4 + $0x78] sm:$0xff] }
   0xb   :  { %236 = vperm.xlu0 %684, %v841_v5   ;;  %687 = vset.pattern.permute.xlu1 %v766_v2  ;;  %v615_v32 = vpack.c.bf16 %v40_v31, %v38_v30  ;;  %v617_v36 = vpack.c.bf16 %v39_v34, %v37_v33  ;;  %v42_v38 = vld [vmem:[%s1117_s4 + $0x68] sm:$0xff]  ;;  %v41_v42 = vld [vmem:[%s1117_s4 + $0x60] sm:$0xff]  ;;  %v43_v43 = vld [vmem:[%s1117_s4 + $0x70] sm:$0xff]  ;;  %p725_p3 = por %p724_p2, %p723_p1 }
   0xc   :  { %76 = vperm.xlu1 %687, %v846_v6   ;;  %640 = vmatprep.subr.bf16.mxu1 %v607_v18  ;;  %v619_v41 = vpack.c.bf16 %v44_v39, %v42_v38  ;;  %v621_v45 = vpack.c.bf16 %v43_v43, %v41_v42  ;;  %v46_v47 = vld [vmem:[%s1117_s4 + $0x88] sm:$0xff]  ;;  %v48_v48 = vld [vmem:[%s1117_s4 + $0x98] sm:$0xff]  ;;  %v45_v50 = vld [vmem:[%s1117_s4 + $0x80] sm:$0xff] }
   0xd   :  { %642 = vmatpush1.bf16.msra.mxu1 %v609_v21  ;;  %608 = vmatprep.subr.bf16.mxu0 %v607_v18  ;;  %v623_v49 = vpack.c.bf16 %v48_v48, %v46_v47  ;;  %v47_v51 = vld [vmem:[%s1117_s4 + $0x90] sm:$0xff]  ;;  %v50_v55 = vld [vmem:[%s1117_s4 + $0xa8] sm:$0xff]  ;;  %v52_v56 = vld [vmem:[%s1117_s4 + $0xb8] sm:$0xff]  ;;  %p726_p4 = pnand %p725_p3, %p719_p0 }
   0xe   :  { %610 = vmatpush1.bf16.msra.mxu0 %v609_v21  ;;  %644 = vmatprep.subr.bf16.mxu1 %v611_v24  ;;  %v625_v53 = vpack.c.bf16 %v47_v51, %v45_v50  ;;  %v627_v58 = vpack.c.bf16 %v52_v56, %v50_v55  ;;  %v49_v59 = vld [vmem:[%s1117_s4 + $0xa0] sm:$0xff]  ;;  %v51_v60 = vld [vmem:[%s1117_s4 + $0xb0] sm:$0xff]  ;;  %v58_v18 = vld [vmem:[%s1117_s4 + $0xe8] sm:$0xff] }
   0xf   :  { %691 = vset.pattern.permute.xlu0 %v767_v4  ;;  %612 = vmatprep.subr.bf16.mxu0 %v611_v24  ;;  %v629_v62 = vpack.c.bf16 %v51_v60, %v49_v59  ;;  %v60_v19 = vld [vmem:[%s1117_s4 + $0xf8] sm:$0xff]  ;;  %v57_v22 = vld [vmem:[%s1117_s4 + $0xe0] sm:$0xff]  ;;  %v59_v23 = vld [vmem:[%s1117_s4 + $0xf0] sm:$0xff] }
  0x10   :  { %89 = vperm.xlu0 %691, %v827_v1   ;;  %242 = vperm.xlu1 %687, %v853_v7   ;;  %v635_v21 = vpack.c.bf16 %v60_v19, %v58_v18  ;;  %v637_v25 = vpack.c.bf16 %v59_v23, %v57_v22 }
  0x11   :  { %646 = vmatpush1.bf16.msra.mxu1 %v613_v27 }
  0x12   :  { %614 = vmatpush1.bf16.msra.mxu0 %v613_v27  ;;  %648 = vmatprep.subr.bf16.mxu1 %v615_v32 }
  0x13   :  { %616 = vmatprep.subr.bf16.mxu0 %v615_v32  ;;  %v774_v32 = vmov 0.0  }
  0x14   :  { %97 = vperm.xlu0 %691, %v846_v6   ;;  %688 = vset.pattern.permute.xlu1 %v768_v8 }
  0x15   :  { %109 = vperm.xlu1 %688, %v827_v1   ;;  %650 = vmatpush1.bf16.msra.mxu1 %v617_v36 }
  0x16   :  { %618 = vmatpush1.bf16.msra.mxu0 %v617_v36  ;;  %652 = vmatprep.subr.bf16.mxu1 %v619_v41 }
  0x17   :  { %620 = vmatprep.subr.bf16.mxu0 %v619_v41  ;;  %554 = vmatprep.mubr.f32.mxu1 %v774_v32 }
  0x18   :  { %263 = vperm.xlu0 %691, %v853_v7   ;;  %458 = vmatprep.mubr.f32.mxu0 %v774_v32 }
  0x19   :  { %117 = vperm.xlu1 %688, %v846_v6   ;;  %654 = vmatpush1.bf16.msra.mxu1 %v621_v45 }
  0x1a   :  { %622 = vmatpush1.bf16.msra.mxu0 %v621_v45  ;;  %656 = vmatprep.subr.bf16.mxu1 %v623_v49 }
  0x1b   :  { %624 = vmatprep.subr.bf16.mxu0 %v623_v49 }
  0x1c   :  { %267 = vperm.xlu0 %691, %v863_v9  }
  0x1d   :  { %283 = vperm.xlu1 %688, %v853_v7   ;;  %658 = vmatpush1.bf16.msra.mxu1 %v625_v53 }
  0x1e   :  { %626 = vmatpush1.bf16.msra.mxu0 %v625_v53  ;;  %660 = vmatprep.subr.bf16.mxu1 %v627_v58 }
  0x1f   :  { %628 = vmatprep.subr.bf16.mxu0 %v627_v58 }
  0x20   :  { %696 = vset.pattern.permute.xlu0 %v768_v8 }
  0x21   :  { %275 = vperm.xlu0 %696, %v822_v0   ;;  %689 = vset.pattern.permute.xlu1 %v767_v4 }
  0x22   :  { %92 = vperm.xlu1 %689, %v834_v3   ;;  %662 = vmatpush1.bf16.msra.mxu1 %v629_v62 }
  0x23   :  { %630 = vmatpush1.bf16.msra.mxu0 %v629_v62 }
  0x25   :  { %121 = vperm.xlu0 %696, %v872_v10  }
  0x26   :  { %690 = vset.pattern.permute.xlu1 %v769_v11 }
  0x27   :  { %129 = vperm.xlu1 %690, %v827_v1  }
  0x29   :  { %700 = vset.pattern.permute.xlu0 %v769_v11 }
  0x2a   :  { %295 = vperm.xlu0 %700, %v822_v0  }
  0x2b   :  { %692 = vset.pattern.permute.xlu1 %v767_v4 }
  0x2c   :  { %258 = vperm.xlu1 %692, %v841_v5  }
  0x2e   :  { %137 = vperm.xlu0 %700, %v846_v6  }
  0x30   :  { %693 = vset.pattern.permute.xlu1 %v766_v2 }
  0x31   :  { %81 = vperm.xlu1 %693, %v872_v10  }
  0x32   :  { %298 = vperm.xlu0 %700, %v841_v5  }
  0x35   :  { %694 = vset.pattern.permute.xlu1 %v767_v4 }
  0x36   :  { %704 = vset.pattern.permute.xlu0 %v770_v12  ;;  %101 = vperm.xlu1 %694, %v872_v10  }
  0x37   :  { %149 = vperm.xlu0 %704, %v827_v1  }
  0x3a   :  { %695 = vset.pattern.permute.xlu1 %v766_v2  ;;  %v56_v2 = vld [vmem:[%s1117_s4 + $0xd8] sm:$0xff] }
  0x3b   :  { %323 = vperm.xlu0 %704, %v853_v7   ;;  %247 = vperm.xlu1 %695, %v863_v9  }
  0x3f   :  { %152 = vperm.xlu0 %704, %v834_v3   ;;  %697 = vset.pattern.permute.xlu1 %v769_v11 }
  0x40   :  { %303 = vperm.xlu1 %697, %v853_v7  }
  0x43   :  { %327 = vperm.xlu0 %704, %v863_v9  }
  0x44   :  { %698 = vset.pattern.permute.xlu1 %v768_v8 }
  0x45   :  { %112 = vperm.xlu1 %698, %v834_v3  }
  0x47   :  { %710 = vset.pattern.permute.xlu0 %v771_v13 }
  0x48   :  { %177 = vperm.xlu0 %710, %v846_v6  }
  0x49   :  { %278 = vperm.xlu1 %698, %v841_v5  }
  0x4c   :  { %181 = vperm.xlu0 %710, %v872_v10  }
  0x4d   :  { %699 = vset.pattern.permute.xlu1 %v770_v12 }
  0x4e   :  { %315 = vperm.xlu1 %699, %v822_v0  }
  0x50   :  { %713 = vset.pattern.permute.xlu0 %v772_v14 }
  0x51   :  { %355 = vperm.xlu0 %713, %v822_v0  }
  0x52   :  { %157 = vperm.xlu1 %699, %v846_v6  }
  0x55   :  { %201 = vperm.xlu0 %713, %v872_v10  }
  0x56   :  { %701 = vset.pattern.permute.xlu1 %v768_v8  ;;  %v53_v8 = vld [vmem:[%s1117_s4 + $0xc0] sm:$0xff] }
  0x57   :  { %287 = vperm.xlu1 %701, %v863_v9  }
  0x59   :  { %716 = vset.pattern.permute.xlu0 %v773_v15 }
  0x5a   :  { %209 = vperm.xlu0 %716, %v827_v1  }
  0x5b   :  { %702 = vset.pattern.permute.xlu1 %v769_v11 }
  0x5c   :  { %132 = vperm.xlu1 %702, %v834_v3  }
  0x5e   :  { %383 = vperm.xlu0 %716, %v853_v7  }
  0x60   :  { %703 = vset.pattern.permute.xlu1 %v771_v13 }
  0x61   :  { %169 = vperm.xlu1 %703, %v827_v1  }
  0x62   :  { %378 = vperm.xlu0 %716, %v841_v5  }
  0x65   :  { %335 = vperm.xlu1 %703, %v822_v0  }
  0x69   :  { %705 = vset.pattern.permute.xlu1 %v769_v11  ;;  %v55_v11 = vld [vmem:[%s1117_s4 + $0xd0] sm:$0xff] }
  0x6a   :  { %141 = vperm.xlu1 %705, %v872_v10  }
  0x6e   :  { %307 = vperm.xlu1 %705, %v863_v9  }
  0x72   :  { %706 = vset.pattern.permute.xlu1 %v771_v13 }
  0x73   :  { %343 = vperm.xlu1 %706, %v853_v7  }
  0x77   :  { %707 = vset.pattern.permute.xlu1 %v772_v14 }
  0x78   :  { %189 = vperm.xlu1 %707, %v827_v1   ;;  %v54_v1 = vld [vmem:[%s1117_s4 + $0xc8] sm:$0xff] }
  0x7c   :  { %708 = vset.pattern.permute.xlu1 %v770_v12  ;;  %v633_v12 = vpack.c.bf16 %v55_v11, %v53_v8 }
  0x7d   :  { %318 = vperm.xlu1 %708, %v841_v5  }
  0x81   :  { %v234_v28 = vpop.permute.xlu1 %233  ;;  %161 = vperm.xlu1 %708, %v872_v10  }
  0x82   :  { %v68_v29 = vpop.permute.xlu0 %67  ;;  %vm238_vm1 = vcmp.eq.s32.totalorder %v971_v44, %v234_v28 }
  0x83   :  { %vm72_vm0 = vcmp.eq.s32.totalorder %v971_v44, %v68_v29 }
  0x85   :  { %709 = vset.pattern.permute.xlu1 %v772_v14 }
  0x86   :  { %v953_v37 = vpop.permute.xlu0 %70  ;;  %v961_v40 = vpop.permute.xlu1 %255  ;;  %197 = vperm.xlu1 %709, %v846_v6  }
  0x87   :  { %vm260_vm3 = vcmp.eq.s32.totalorder %v971_v44, %v961_v40  ;;  %vm73_vm8 = vcmp.eq.s32.totalorder %v971_v44, %v953_v37 }
  0x8a   :  { %v974_v46 = vpop.permute.xlu0 %236  ;;  %363 = vperm.xlu1 %709, %v853_v7   ;;  %v631_v7 = vpack.c.bf16 %v56_v2, %v54_v1 }
  0x8b   :  { %v77_v52 = vpop.permute.xlu1 %76  ;;  %vm239_vm10 = vcmp.eq.s32.totalorder %v971_v44, %v974_v46 }
  0x8c   :  { %v84_v54 = vsel %vm72_vm0, %v77_v52, 0.0  ;;  %664 = vmatprep.subr.bf16.mxu1 %v631_v7  ;;  %632 = vmatprep.subr.bf16.mxu0 %v631_v7 }
  0x8d   :  { %666 = vmatpush1.bf16.msra.mxu1 %v633_v12  ;;  %634 = vmatpush1.bf16.msra.mxu0 %v633_v12 }
  0x8e   :  { %711 = vset.pattern.permute.xlu1 %v771_v13  ;;  %668 = vmatprep.subr.bf16.mxu1 %v635_v21 }
  0x8f   :  { %v90_v57 = vpop.permute.xlu0 %89  ;;  %v243_v61 = vpop.permute.xlu1 %242  ;;  %172 = vperm.xlu1 %711, %v834_v3   ;;  %636 = vmatprep.subr.bf16.mxu0 %v635_v21 }
  0x90   :  { %v250_v63 = vsel %vm238_vm1, %v243_v61, 0.0  ;;  %vm94_vm2 = vcmp.eq.s32.totalorder %v971_v44, %v90_v57 }
  0x91   :  { %670 = vmatpush1.bf16.msra.mxu1 %v637_v25  ;;  %638 = vmatpush1.bf16.msra.mxu0 %v637_v25 }
  0x93   :  { %v98_v4 = vpop.permute.xlu0 %97  ;;  %338 = vperm.xlu1 %711, %v841_v5  }
  0x94   :  { %v110_v16 = vpop.permute.xlu1 %109  ;;  %v104_v17 = vsel %vm94_vm2, %v98_v4, 0.0 }
  0x95   :  { %v106_v26 = vadd.f32 %v104_v17, %v84_v54  ;;  %vm114_vm4 = vcmp.eq.s32.totalorder %v971_v44, %v110_v16 }
  0x97   :  { %v264_v20 = vpop.permute.xlu0 %263  ;;  %712 = vset.pattern.permute.xlu1 %v773_v15 }
  0x98   :  { %v270_v24 = vsel %vm260_vm3, %v264_v20, 0.0  ;;  %375 = vperm.xlu1 %712, %v822_v0   ;;  %v118_v28 = vpop.permute.xlu1 %117 }
  0x99   :  { %v272_v27 = vadd.f32 %v270_v24, %v250_v63  ;;  %v124_v29 = vsel %vm114_vm4, %v118_v28, 0.0 }
  0x9a   :  { %v126_v30 = vadd.f32 %v124_v29, %v106_v26 }
  0x9b   :  { %v268_v31 = vpop.permute.xlu0 %267 }
  0x9c   :  { %217 = vperm.xlu1 %712, %v846_v6   ;;  %v284_v33 = vpop.permute.xlu1 %283 }
  0xa0   :  { %v276_v34 = vpop.permute.xlu0 %275  ;;  %714 = vset.pattern.permute.xlu1 %v771_v13 }
  0xa1   :  { %vm280_vm5 = vcmp.eq.s32.totalorder %v971_v44, %v276_v34  ;;  %347 = vperm.xlu1 %714, %v863_v9   ;;  %v93_v36 = vpop.permute.xlu1 %92 }
  0xa2   :  { %v290_v0 = vsel %vm280_vm5, %v284_v33, 0.0  ;;  %vm95_vm9 = vcmp.eq.s32.totalorder %v971_v44, %v93_v36 }
  0xa3   :  { %v292_v38 = vadd.f32 %v290_v0, %v272_v27 }
  0xa4   :  { %v122_v39 = vpop.permute.xlu0 %121 }
  0xa5   :  { %715 = vset.pattern.permute.xlu1 %v772_v14 }
  0xa6   :  { %192 = vperm.xlu1 %715, %v834_v3   ;;  %v130_v40 = vpop.permute.xlu1 %129 }
  0xa7   :  { %vm134_vm6 = vcmp.eq.s32.totalorder %v971_v44, %v130_v40 }
  0xa9   :  { %v296_v6 = vpop.permute.xlu0 %295 }
  0xaa   :  { %358 = vperm.xlu1 %715, %v841_v5   ;;  %vm300_vm11 = vcmp.eq.s32.totalorder %v971_v44, %v296_v6 }
  0xab   :  { %v259_v41 = vpop.permute.xlu1 %258 }
  0xac   :  { %vm261_vm7 = vcmp.eq.s32.totalorder %v971_v44, %v259_v41 }
  0xad   :  { %v138_v13 = vpop.permute.xlu0 %137  ;;  %v271_v42 = vsel %vm261_vm7, %v268_v31, 0.0 }
  0xae   :  { %v144_v43 = vsel %vm134_vm6, %v138_v13, 0.0  ;;  %367 = vperm.xlu1 %715, %v863_v9  }
  0xaf   :  { %v1048_v45 = vadd.f32 %v144_v43, %v126_v30 }
  0xb0   :  { %v82_v14 = vpop.permute.xlu1 %81 }
  0xb1   :  { %v85_v47 = vsel %vm73_vm8, %v82_v14, 0.0  ;;  %v299_v60 = vpop.permute.xlu0 %298 }
  0xb2   :  { %717 = vset.pattern.permute.xlu1 %v773_v15  ;;  %vm301_vm15 = vcmp.eq.s32.totalorder %v971_v44, %v299_v60 }
  0xb3   :  { %212 = vperm.xlu1 %717, %v834_v3  }
  0xb5   :  { %v102_v5 = vpop.permute.xlu1 %101 }
  0xb6   :  { %v105_v48 = vsel %vm95_vm9, %v102_v5, 0.0  ;;  %v150_v63 = vpop.permute.xlu0 %149 }
  0xb7   :  { %v107_v49 = vadd.f32 %v105_v48, %v85_v47  ;;  %221 = vperm.xlu1 %717, %v872_v10   ;;  %vm154_vm1 = vcmp.eq.s32.totalorder %v971_v44, %v150_v63 }
  0xba   :  { %v248_v37 = vpop.permute.xlu1 %247  ;;  %v324_v7 = vpop.permute.xlu0 %323 }
  0xbb   :  { %v251_v50 = vsel %vm239_vm10, %v248_v37, 0.0  ;;  %387 = vperm.xlu1 %717, %v863_v9  }
  0xbc   :  { %v273_v51 = vadd.f32 %v271_v42, %v251_v50 }
  0xbe   :  { %v153_v16 = vpop.permute.xlu0 %152 }
  0xbf   :  { %v304_v15 = vpop.permute.xlu1 %303  ;;  %vm155_vm8 = vcmp.eq.s32.totalorder %v971_v44, %v153_v16 }
  0xc0   :  { %v310_v52 = vsel %vm300_vm11, %v304_v15, 0.0 }
  0xc1   :  { %v312_v3 = vadd.f32 %v310_v52, %v292_v38 }
  0xc2   :  { %v328_v18 = vpop.permute.xlu0 %327 }
  0xc4   :  { %v113_v53 = vpop.permute.xlu1 %112 }
  0xc5   :  { %vm115_vm12 = vcmp.eq.s32.totalorder %v971_v44, %v113_v53 }
  0xc6   :  { %v125_v54 = vsel %vm115_vm12, %v122_v39, 0.0 }
  0xc7   :  { %v127_v55 = vadd.f32 %v125_v54, %v107_v49  ;;  %v178_v20 = vpop.permute.xlu0 %177 }
  0xc8   :  { %v279_v56 = vpop.permute.xlu1 %278 }
  0xc9   :  { %vm281_vm13 = vcmp.eq.s32.totalorder %v971_v44, %v279_v56 }
  0xcb   :  { %v182_v23 = vpop.permute.xlu0 %181 }
  0xcd   :  { %v316_v10 = vpop.permute.xlu1 %315 }
  0xce   :  { %vm320_vm0 = vcmp.eq.s32.totalorder %v971_v44, %v316_v10 }
  0xcf   :  { %v330_v30 = vsel %vm320_vm0, %v324_v7, 0.0  ;;  %v473_v7 = vshrl.u32 %v27_v35, 7 }
  0xd0   :  { %v356_v25 = vpop.permute.xlu0 %355  ;;  %v332_v34 = vadd.f32 %v330_v30, %v312_v3 }
  0xd1   :  { %v158_v57 = vpop.permute.xlu1 %157  ;;  %vm360_vm3 = vcmp.eq.s32.totalorder %v971_v44, %v356_v25 }
  0xd2   :  { %v164_v0 = vsel %vm154_vm1, %v158_v57, 0.0 }
  0xd3   :  { %v166_v6 = vadd.f32 %v164_v0, %v1048_v45 }
  0xd4   :  { %v202_v27 = vpop.permute.xlu0 %201 }
  0xd6   :  { %v288_v46 = vpop.permute.xlu1 %287 }
  0xd7   :  { %v291_v58 = vsel %vm281_vm13, %v288_v46, 0.0 }
  0xd8   :  { %v293_v59 = vadd.f32 %v291_v58, %v273_v51 }
  0xd9   :  { %v210_v29 = vpop.permute.xlu0 %209 }
  0xda   :  { %vm214_vm7 = vcmp.eq.s32.totalorder %v971_v44, %v210_v29 }
  0xdb   :  { %v133_v9 = vpop.permute.xlu1 %132 }
  0xdc   :  { %vm135_vm14 = vcmp.eq.s32.totalorder %v971_v44, %v133_v9 }
  0xdd   :  { %v384_v40 = vpop.permute.xlu0 %383 }
  0xe0   :  { %v170_v61 = vpop.permute.xlu1 %169 }
  0xe1   :  { %vm174_vm4 = vcmp.eq.s32.totalorder %v971_v44, %v170_v61  ;;  %v379_v9 = vpop.permute.xlu0 %378 }
  0xe2   :  { %v184_v38 = vsel %vm174_vm4, %v178_v20, 0.0 }
  0xe3   :  { %v186_v43 = vadd.f32 %v184_v38, %v166_v6 }
  0xe4   :  { %v336_v62 = vpop.permute.xlu1 %335 }
  0xe5   :  { %vm340_vm2 = vcmp.eq.s32.totalorder %v971_v44, %v336_v62 }
  0xe9   :  { %v142_v1 = vpop.permute.xlu1 %141 }
  0xea   :  { %v145_v2 = vsel %vm135_vm14, %v142_v1, 0.0 }
  0xeb   :  { %v147_v4 = vadd.f32 %v145_v2, %v127_v55 }
  0xed   :  { %v308_v8 = vpop.permute.xlu1 %307 }
  0xee   :  { %v311_v11 = vsel %vm301_vm15, %v308_v8, 0.0  ;;  %vm381_vm15 = vcmp.eq.s32.totalorder %v971_v44, %v379_v9  ;;  %v474_v8 = vsub.s32 0, %v473_v7 }
  0xef   :  { %v1063_v12 = vadd.f32 %v311_v11, %v293_v59  ;;  %v61_v11 = vld [vmem:[%s1118_s5] ss:$8 sm:$0x3]  ;;  %s776_s5 = smov [#allocation4]  }
  0xf0   :  { %v475_v16 = vrot.slane %v61_v11, %v474_v8  ;;  %s592_s26 = sshll.u32 %s776_s5, 4  ;;  %s593_s26 = int_to_ptr.vmem [resolvable:$true] %s592_s26 }
  0xf2   :  { %v344_v17 = vpop.permute.xlu1 %343 }
  0xf3   :  { %v350_v33 = vsel %vm340_vm2, %v344_v17, 0.0 }
  0xf4   :  { %v352_v39 = vadd.f32 %v350_v33, %v332_v34 }
  0xf7   :  { %v190_v19 = vpop.permute.xlu1 %189 }
  0xf8   :  { %vm194_vm5 = vcmp.eq.s32.totalorder %v971_v44, %v190_v19 }
  0xfc   :  { %v319_v21 = vpop.permute.xlu1 %318 }
  0xfd   :  { %vm321_vm10 = vcmp.eq.s32.totalorder %v971_v44, %v319_v21 }
  0xfe   :  { %v331_v55 = vsel %vm321_vm10, %v328_v18, 0.0 }
  0xff   :  { %v333_v57 = vadd.f32 %v331_v55, %v1063_v12  ;;  %v478_v12 = vsub.s32 1, %v473_v7 }
 0x100   :  { %v162_v22 = vpop.permute.xlu1 %161 }
 0x101   :  { %v165_v52 = vsel %vm155_vm8, %v162_v22, 0.0  ;;  %v479_v17 = vrot.slane %v61_v11, %v478_v12 }
 0x102   :  { %v167_v53 = vadd.f32 %v165_v52, %v147_v4 }
 0x105   :  { %v198_v24 = vpop.permute.xlu1 %197 }
 0x106   :  { %v204_v13 = vsel %vm194_vm5, %v198_v24, 0.0 }
 0x107   :  { %v206_v5 = vadd.f32 %v204_v13, %v186_v43 }
 0x109   :  { %v364_v26 = vpop.permute.xlu1 %363 }
 0x10a   :  { %v370_v36 = vsel %vm360_vm3, %v364_v26, 0.0 }
 0x10b   :  { %v372_v42 = vadd.f32 %v370_v36, %v352_v39 }
 0x10e   :  { %v173_v28 = vpop.permute.xlu1 %172 }
 0x10f   :  { %vm175_vm9 = vcmp.eq.s32.totalorder %v971_v44, %v173_v28 }
 0x110   :  { %v185_v3 = vsel %vm175_vm9, %v182_v23, 0.0 }
 0x111   :  { %v187_v10 = vadd.f32 %v185_v3, %v167_v53 }
 0x112   :  { %v339_v31 = vpop.permute.xlu1 %338 }
 0x113   :  { %vm341_vm12 = vcmp.eq.s32.totalorder %v971_v44, %v339_v31 }
 0x117   :  { %v376_v41 = vpop.permute.xlu1 %375 }
 0x118   :  { %vm380_vm6 = vcmp.eq.s32.totalorder %v971_v44, %v376_v41 }
 0x119   :  { %v390_v14 = vsel %vm380_vm6, %v384_v40, 0.0 }
 0x11a   :  { %v392_v47 = vadd.f32 %v390_v14, %v372_v42 }
 0x11b   :  { %v218_v48 = vpop.permute.xlu1 %217 }
 0x11c   :  { %v224_v49 = vsel %vm214_vm7, %v218_v48, 0.0  ;;  %555 = vmatmul.mubr.f32.vlgmr.msra.gmra.mrb[0].mxu1 %v392_v47 }
 0x11d   :  { %v226_v37 = vadd.f32 %v224_v49, %v206_v5  ;;  %560 = vmatprep.mubr.f32.mxu1 %v774_v32 }
 0x11f   :  { %459 = vmatmul.mubr.f32.vlgmr.msra.gmra.mrb[0].mxu0 %v226_v37 }
 0x120   :  { %v348_v45 = vpop.permute.xlu1 %347  ;;  %464 = vmatprep.mubr.f32.mxu0 %v774_v32 }
 0x121   :  { %v351_v32 = vsel %vm341_vm12, %v348_v45, 0.0 }
 0x122   :  { %v353_v61 = vadd.f32 %v351_v32, %v333_v57 }
 0x125   :  { %v193_v50 = vpop.permute.xlu1 %192 }
 0x126   :  { %vm195_vm11 = vcmp.eq.s32.totalorder %v971_v44, %v193_v50 }
 0x127   :  { %v205_v56 = vsel %vm195_vm11, %v202_v27, 0.0 }
 0x128   :  { %v207_v46 = vadd.f32 %v205_v56, %v187_v10 }
 0x129   :  { %v359_v51 = vpop.permute.xlu1 %358 }
 0x12a   :  { %vm361_vm13 = vcmp.eq.s32.totalorder %v971_v44, %v359_v51 }
 0x12d   :  { %v368_v15 = vpop.permute.xlu1 %367 }
 0x12e   :  { %v371_v59 = vsel %vm361_vm13, %v368_v15, 0.0 }
 0x12f   :  { %v373_v63 = vadd.f32 %v371_v59, %v353_v61 }
 0x132   :  { %v213_v54 = vpop.permute.xlu1 %212 }
 0x133   :  { %vm215_vm14 = vcmp.eq.s32.totalorder %v971_v44, %v213_v54 }
 0x136   :  { %v222_v58 = vpop.permute.xlu1 %221 }
 0x137   :  { %v225_v60 = vsel %vm215_vm14, %v222_v58, 0.0 }
 0x138   :  { %v227_v62 = vadd.f32 %v225_v60, %v207_v46 }
 0x13a   :  { %v388_v1 = vpop.permute.xlu1 %387  ;;  %465 = vmatmul.mubr.f32.gmra.mrb[2].mxu0 %v227_v62 }
 0x13b   :  { %v391_v2 = vsel %vm381_vm15, %v388_v1, 0.0 }
 0x13c   :  { %v393_v4 = vadd.f32 %v391_v2, %v373_v63 }
 0x13e   :  { %561 = vmatmul.mubr.f32.gmra.mrb[2].mxu1 %v393_v4 }
 0x1ef   :  { %v556_v18 = vpop.f32.mrb[0].mxu1 }
 0x1f0   :  { %v567_v19 = vadd.f32 %v556_v18, %v475_v16  ;;  %v558_v20 = vpop.f32.mrb[1].mxu1 }
 0x1f1   :  { %v568_v21 = vadd.f32 %v558_v20, %v479_v17 }
 0x1f2   :  { %571 = vst [vmem:[#allocation4] sm:$0xff] %v567_v19  ;;  %v460_v44 = vpop.f32.mrb[0].mxu0 }
 0x1f3   :  { %572 = vst [vmem:[#allocation4 + $0x8] sm:$0xff] %v568_v21  ;;  %v482_v22 = vadd.f32 %v475_v16, %v460_v44  ;;  %v462_v23 = vpop.f32.mrb[1].mxu0 }
 0x1f4   :  { %v483_v24 = vadd.f32 %v479_v17, %v462_v23 }
 0x1f5   :  { %486 = vst [vmem:[#allocation2] sm:$0xff] %v482_v22 }
 0x1f6   :  { %487 = vst [vmem:[#allocation2 + $0x8] sm:$0xff] %v483_v24 }
 0x20d   :  { %v466_v35 = vpop.f32.mrb[2].mxu0 }
 0x20e   :  { %v484_v25 = vadd.f32 %v475_v16, %v466_v35  ;;  %v468_v26 = vpop.f32.mrb[3].mxu0 }
 0x20f   :  { %v485_v27 = vadd.f32 %v479_v17, %v468_v26 }
 0x210   :  { %488 = vst [vmem:[#allocation2 + $0x10] sm:$0xff] %v484_v25 }
 0x211   :  { %489 = vst [vmem:[#allocation2 + $0x18] sm:$0xff] %v485_v27  ;;  %v562_v28 = vpop.f32.mrb[2].mxu1 }
 0x212   :  { %v569_v29 = vadd.f32 %v562_v28, %v475_v16  ;;  %v564_v30 = vpop.f32.mrb[3].mxu1 }
 0x213   :  { %729 = shalt.err (!%p726_p4)
}
 0x214   :  { %s730_s30 = scalar_lea.hbm %s1119_s6, 512 }
 0x215   :  { %p731_p5 = scmp.ne.s32.totalorder %s1119_s6, %s730_s30  ;;  %p734_p6 = scmp.lt.u32.totalorder %s730_s30, %s1119_s6 }
 0x217   :  { %p736_p7 = pnand %p734_p6, %p731_p5 }
 0x219   :  { %739 = shalt.err (!%p736_p7)
}
 0x21a   :  { %s777_s11 = smov 256   ;;  %s778_s2 = smov 16   ;;  %v570_v31 = vadd.f32 %v564_v30, %v479_v17  ;;  %573 = vst [vmem:[#allocation4 + $0x10] sm:$0xff] %v569_v29 }
 0x21b   :  { %586 = dma.vmem_to_hbm [thread:$0]  %s581_s25, 512, %s1119_s6, [#allocation3], %s777_s11, %s777_s11, %s778_s2  }
 0x21c   :  { %574 = vst [vmem:[#allocation4 + $0x18] sm:$0xff] %v570_v31  ;;  %s740_s14 = scalar_lea.vmem %s593_s26, 512  ;;  %p745_p9 = scmp.lt.s32.totalorder %s593_s26, %s593_s26 }
 0x21d   :  { %p741_p8 = scmp.ne.s32.totalorder %s593_s26, %s740_s14  ;;  %p746_p10 = scmp.lt.s32.totalorder %s740_s14, %s740_s14 }
 0x21f   :  { %p747_p11 = por %p746_p10, %p745_p9 }
 0x221   :  { %p748_p12 = pnand %p747_p11, %p741_p8 }
 0x223   :  { %751 = shalt.err (!%p748_p12)
}
 0x224   :  { %s752_s15 = scalar_lea.hbm %s1120_s7, 512 }
 0x225   :  { %p753_p13 = scmp.ne.s32.totalorder %s1120_s7, %s752_s15  ;;  %p756_p0 = scmp.lt.u32.totalorder %s752_s15, %s1120_s7 }
 0x227   :  { %p758_p1 = pnand %p756_p0, %p753_p13 }
 0x229   :  { %761 = shalt.err (!%p758_p1)
}
 0x22a   :  { %598 = dma.vmem_to_hbm [thread:$0]  %s593_s26, 512, %s1120_s7, [#allocation5], %s777_s11, %s777_s11, %s778_s2  }
 0x22b   :  { %762 = dma.done.wait [#allocation3], 512  }
 0x22c   :  { %763 = vsyncadd [#allocation3], 4294966784 }
 0x22d   :  { %764 = dma.done.wait [#allocation5], 512  }
 0x22e   :  { %765 = vsyncadd [#allocation5], 4294966784 }
 0x22f   :  { %605 = vsyncpa [#allocation3], 1 }
 0x230   :  { %606 = vsyncpa [#allocation5], 1 }

</bundles_post_ra>
